<compile_context>
chip_gen: v7x
topology: tpu7x:2x2x1
jax: 0.10.0
libtpu: 0.0.40
codegen_flags: <defaults>
</compile_context>

<pallas_src>
import functools

import numpy as np
import jax
import jax.numpy as jnp
from jax.experimental import pallas as pl
from jax.experimental.pallas import tpu as pltpu


_VMEM_BUDGET_BYTES = 12 << 20     # double-buffered in+out tiles; fits every gen
_SEL_MATMUL_MAX_BYTES = 4 << 20   # above this, selection matrix too big / not free


def _round_up(x, m):
    return (x + m - 1) // m * m


def _sublane_align(dtype):
    """Minimum sublane multiple for this dtype (8 f32 / 16 bf16 / 32 int8)."""
    return max(8, 32 // jnp.dtype(dtype).itemsize)


def _pick_bc_tile(bc, n, m, itemsize, align, extra_bytes):
    """Largest sublane-aligned tile of the fused B*C axis that keeps the
    double-buffered in+out working set under the VMEM budget, preferring >=2
    grid steps so the 'parallel' axis spans both TensorCores on v7x."""
    row_bytes = 2 * (n * n + m) * itemsize            # double-buffered in + out
    budget = max(_VMEM_BUDGET_BYTES - extra_bytes, align * row_bytes)
    max_tb = max(align, (budget // row_bytes) // align * align)
    max_tb = min(max_tb, bc)
    if bc >= 2 * align:                                # keep >= 2 grid steps
        max_tb = min(max_tb, max(align, (bc // 2) // align * align))
    for t in range(max_tb, align - 1, -align):         # largest aligned divisor
        if bc % t == 0:
            return t
    return align


def _spd_vectorize_dot_kernel(x_ref, sel_ref, o_ref):
    # One full-width selection matmul on the MXU.  Every sel column has exactly
    # one 1.0, so the result is an exact copy of the selected input element.
    o_ref[...] = jnp.dot(
        x_ref[...], sel_ref[...], preferred_element_type=jnp.float32
    ).astype(o_ref.dtype)


def _spd_vectorize_slice_kernel(x_ref, o_ref, *, n):
    # Large-N fallback: copy each row's upper-triangle segment directly from
    # the input ref (no full-tile materialization -> no vreg spills).
    off = 0
    for r in range(n):                                 # static, fully unrolled
        seg = n - r
        o_ref[:, off:off + seg] = x_ref[:, r * n + r:(r + 1) * n]
        off += seg


def spd_vectorize(x, use_mxu=None):
    """Pallas implementation of SPDVectorize.forward. x: (B, C, N, N) -> (B, C, M)."""
    B, C, N, N2 = x.shape
    assert N == N2, "SPD matrices must be square"
    M = N * (N + 1) // 2
    BC = B * C
    dtype = x.dtype
    itemsize = jnp.dtype(dtype).itemsize
    align = _sublane_align(dtype)

    xf = x.reshape(BC, N * N)                          # row-major: (r, c) -> r*N + c

    # Pad the fused batch*channel axis to the dtype sublane multiple instead of
    # pulling the whole array into VMEM as a single block.
    BC_pad = _round_up(BC, align)
    if BC_pad != BC:
        xf = jnp.pad(xf, ((0, BC_pad - BC), (0, 0)))

    sel_bytes = N * N * M * itemsize
    if use_mxu is None:
        use_mxu = bool(jnp.issubdtype(dtype, jnp.floating)
                       and sel_bytes <= _SEL_MATMUL_MAX_BYTES)

    extra = 2 * sel_bytes if use_mxu else 0            # sel is double-buffered too
    TB = _pick_bc_tile(BC_pad, N, M, itemsize, align, extra)
    grid = (BC_pad // TB,)

    compiler_params = pltpu.CompilerParams(
        dimension_semantics=("parallel",),
        vmem_limit_bytes=32 << 20,
    )
    io_bytes = BC_pad * (N * N + M) * itemsize

    if use_mxu:
        # Static 0/1 selection matrix: column j picks flat lane row*N + col.
        row_idx, col_idx = np.triu_indices(N)
        sel_np = np.zeros((N * N, M), dtype=np.float32)
        sel_np[row_idx * N + col_idx, np.arange(M)] = 1.0
        sel = jnp.asarray(sel_np, dtype=dtype)

        out = pl.pallas_call(
            _spd_vectorize_dot_kernel,
            out_shape=jax.ShapeDtypeStruct((BC_pad, M), dtype),
            grid=grid,
            in_specs=[
                pl.BlockSpec((TB, N * N), lambda i: (i, 0)),
                pl.BlockSpec((N * N, M), lambda i: (0, 0)),   # constant block: DMA'd once
            ],
            out_specs=pl.BlockSpec((TB, M), lambda i: (i, 0)),
            compiler_params=compiler_params,
            cost_estimate=pl.CostEstimate(
                flops=2 * BC_pad * N * N * M,
                transcendentals=0,
                bytes_accessed=io_bytes + sel_bytes),
        )(xf, sel)
    else:
        # TODO(synk): for very large N, a manual-DMA (pl.ANY + make_async_copy)
        # path fetching only the triu column range [r, N) per row group would
        # cut HBM reads ~1.5x; the rectangular tile read is kept here.
        out = pl.pallas_call(
            functools.partial(_spd_vectorize_slice_kernel, n=N),
            out_shape=jax.ShapeDtypeStruct((BC_pad, M), dtype),
            grid=grid,
            in_specs=[pl.BlockSpec((TB, N * N), lambda i: (i, 0))],
            out_specs=pl.BlockSpec((TB, M), lambda i: (i, 0)),
            compiler_params=compiler_params,
            cost_estimate=pl.CostEstimate(
                flops=0, transcendentals=0, bytes_accessed=io_bytes),
        )(xf)

    if BC_pad != BC:
        out = out[:BC]
    return out.reshape(B, C, M)


def spd_vectorize_reference(x):
    """Pure-JAX reference matching the PyTorch forward."""
    N = x.shape[-1]
    row_idx, col_idx = np.triu_indices(N)
    return x[:, :, row_idx, col_idx]


if __name__ == "__main__":
    key = jax.random.PRNGKey(0)
    k1, k2 = jax.random.split(key)

    # Case 1: batch=2, channels=4, 16x16 matrices -> 136 triu elements (MXU path).
    B, C, N = 2, 4, 16
    x = jax.random.normal(k1, (B, C, N, N), jnp.float32)
    out = jax.block_until_ready(spd_vectorize(x))
    ref = jax.block_until_ready(spd_vectorize_reference(x))
    assert out.shape == (B, C, N * (N + 1) // 2), out.shape
    assert bool(jnp.allclose(out, ref, rtol=1e-6, atol=1e-6)), \
        float(jnp.max(jnp.abs(out - ref)))

    # Case 2: odd matrix size, more channels (MXU path, multi-step grid).
    B2, C2, N2 = 2, 8, 7
    x2 = jax.random.normal(k2, (B2, C2, N2, N2), jnp.float32)
    out2 = jax.block_until_ready(spd_vectorize(x2))
    ref2 = jax.block_until_ready(spd_vectorize_reference(x2))
    assert out2.shape == (B2, C2, N2 * (N2 + 1) // 2), out2.shape
    assert bool(jnp.allclose(out2, ref2, rtol=1e-6, atol=1e-6)), \
        float(jnp.max(jnp.abs(out2 - ref2)))

    # Case 3: force the large-N slice-copy path on case-1 data (exact copies).
    out3 = jax.block_until_ready(spd_vectorize(x, use_mxu=False))
    assert bool(jnp.array_equal(out3, ref)), float(jnp.max(jnp.abs(out3 - ref)))

    print("KERNEL_OK")
</pallas_src>

<mosaic_0001>
module attributes {stable_mosaic.version = 11 : i64} {
  func.func @_spd_vectorize_dot_kernel(%arg0: i32, %arg1: memref<8x256xf32, #tpu.memory_space<vmem>>, %arg2: memref<256x136xf32, #tpu.memory_space<vmem>>, %arg3: memref<8x136xf32, #tpu.memory_space<vmem>>) attributes {dimension_semantics = [#tpu.dimension_semantics<parallel>], iteration_bounds = array<i64: 1>, scalar_prefetch = 0 : i64, scratch_operands = 0 : i64, tpu.core_type = #tpu.core_type<tc>, window_params = [{transform_indices = @transform_0, window_bounds = array<i64: 8, 256>}, {pipeline_mode = #tpu.pipeline_mode<synchronous>, transform_indices = @transform_1, window_bounds = array<i64: 256, 136>}, {transform_indices = @transform_2, window_bounds = array<i64: 8, 136>}]} {
    %c0 = arith.constant 0 : index
    %c0_0 = arith.constant 0 : index
    %0 = vector.load %arg1[%c0, %c0_0] : memref<8x256xf32, #tpu.memory_space<vmem>>, vector<8x256xf32>
    %c0_1 = arith.constant 0 : index
    %c0_2 = arith.constant 0 : index
    %1 = vector.load %arg2[%c0_1, %c0_2] : memref<256x136xf32, #tpu.memory_space<vmem>>, vector<256x136xf32>
    %cst = arith.constant dense<0.000000e+00> : vector<8x136xf32>
    %2 = tpu.matmul %0, %1, %cst {dimension_numbers = #tpu.dot_dimension_numbers<[1], [0], [0], [1], [0, 0, 1, 1], [], []>} : vector<8x256xf32>, vector<256x136xf32>, vector<8x136xf32> -> vector<8x136xf32>
    %c0_3 = arith.constant 0 : index
    %c0_4 = arith.constant 0 : index
    %3 = vector.load %arg3[%c0_3, %c0_4] : memref<8x136xf32, #tpu.memory_space<vmem>>, vector<8x136xf32>
    tpu.vector_store %arg3[%c0_3, %c0_4], %2 {strides = array<i32>} : memref<8x136xf32, #tpu.memory_space<vmem>>, vector<8x136xf32>,
    return
  }
  func.func @transform_0(%arg0: i32) -> (i32, i32) {
    %c0_i32 = arith.constant 0 : i32
    %c0_i32_0 = arith.constant 0 : i32
    return %arg0, %c0_i32 : i32, i32
  }
  func.func @transform_1(%arg0: i32) -> (i32, i32) {
    %c0_i32 = arith.constant 0 : i32
    %c0_i32_0 = arith.constant 0 : i32
    %c0_i32_1 = arith.constant 0 : i32
    return %c0_i32, %c0_i32_0 : i32, i32
  }
  func.func @transform_2(%arg0: i32) -> (i32, i32) {
    %c0_i32 = arith.constant 0 : i32
    %c0_i32_0 = arith.constant 0 : i32
    return %arg0, %c0_i32 : i32, i32
  }
}

</mosaic_0001>

<bundles_post_ra>
// kernel: tpu_custom_call.1
= control target key start
LH: loop header
LB: loop body
LE: loop exit
PB: predicated region body
PF: predicated region fallthrough
CT: control target
= control target key end

     0   :  { %s481_s0 = inlined_call_operand.vmem [shape: f32[8,256], index: 0, kind: input, shape index: {}]   ;;  %s482_s1 = inlined_call_operand.vmem [shape: f32[256,136], index: 1, kind: input, shape index: {}]   ;;  %s483_s2 = inlined_call_operand.hbm [shape: f32[8,136], index: 2, kind: output, shape index: {}]  }
   0x1   :  { %v15_v0 = vld [vmem:[%s482_s1 + $0x8] sm:$0xff]  ;;  %v17_v1 = vld [vmem:[%s482_s1 + $0x18] sm:$0xff]  ;;  %v14_v2 = vld [vmem:[%s482_s1] sm:$0xff] }
   0x2   :  { %v166_v3 = vpack.c.bf16 %v17_v1, %v15_v0  ;;  %v16_v4 = vld [vmem:[%s482_s1 + $0x10] sm:$0xff]  ;;  %v19_v5 = vld [vmem:[%s482_s1 + $0x28] sm:$0xff]  ;;  %v21_v6 = vld [vmem:[%s482_s1 + $0x38] sm:$0xff] }
   0x3   :  { %v168_v7 = vpack.c.bf16 %v16_v4, %v14_v2  ;;  %v170_v8 = vpack.c.bf16 %v21_v6, %v19_v5  ;;  %v18_v9 = vld [vmem:[%s482_s1 + $0x20] sm:$0xff]  ;;  %v20_v10 = vld [vmem:[%s482_s1 + $0x30] sm:$0xff]  ;;  %v23_v11 = vld [vmem:[%s482_s1 + $0x48] sm:$0xff] }
   0x4   :  { %167 = vmatprep.subr.bf16.mxu0 %v166_v3  ;;  %v25_v12 = vld [vmem:[%s482_s1 + $0x58] sm:$0xff]  ;;  %v172_v13 = vpack.c.bf16 %v20_v10, %v18_v9  ;;  %v22_v15 = vld [vmem:[%s482_s1 + $0x40] sm:$0xff]  ;;  %v24_v16 = vld [vmem:[%s482_s1 + $0x50] sm:$0xff] }
   0x5   :  { %169 = vmatpush1.bf16.msra.mxu0 %v168_v7  ;;  %v174_v14 = vpack.c.bf16 %v25_v12, %v23_v11  ;;  %v27_v17 = vld [vmem:[%s482_s1 + $0x68] sm:$0xff]  ;;  %v29_v18 = vld [vmem:[%s482_s1 + $0x78] sm:$0xff]  ;;  %v176_v19 = vpack.c.bf16 %v24_v16, %v22_v15  ;;  %v26_v21 = vld [vmem:[%s482_s1 + $0x60] sm:$0xff] }
   0x6   :  { %171 = vmatprep.subr.bf16.mxu0 %v170_v8  ;;  %v178_v20 = vpack.c.bf16 %v29_v18, %v27_v17  ;;  %v28_v22 = vld [vmem:[%s482_s1 + $0x70] sm:$0xff]  ;;  %v31_v23 = vld [vmem:[%s482_s1 + $0x88] sm:$0xff]  ;;  %v33_v24 = vld [vmem:[%s482_s1 + $0x98] sm:$0xff] }
   0x7   :  { %v180_v25 = vpack.c.bf16 %v28_v22, %v26_v21  ;;  %v182_v26 = vpack.c.bf16 %v33_v24, %v31_v23  ;;  %v30_v27 = vld [vmem:[%s482_s1 + $0x80] sm:$0xff]  ;;  %v32_v28 = vld [vmem:[%s482_s1 + $0x90] sm:$0xff]  ;;  %v35_v29 = vld [vmem:[%s482_s1 + $0xa8] sm:$0xff] }
   0x8   :  { %v37_v30 = vld [vmem:[%s482_s1 + $0xb8] sm:$0xff]  ;;  %v184_v31 = vpack.c.bf16 %v32_v28, %v30_v27  ;;  %v34_v33 = vld [vmem:[%s482_s1 + $0xa0] sm:$0xff]  ;;  %v36_v34 = vld [vmem:[%s482_s1 + $0xb0] sm:$0xff] }
   0x9   :  { %173 = vmatpush1.bf16.msra.mxu0 %v172_v13  ;;  %v186_v32 = vpack.c.bf16 %v37_v30, %v35_v29  ;;  %v39_v35 = vld [vmem:[%s482_s1 + $0xc8] sm:$0xff]  ;;  %v41_v36 = vld [vmem:[%s482_s1 + $0xd8] sm:$0xff]  ;;  %v188_v37 = vpack.c.bf16 %v36_v34, %v34_v33  ;;  %v38_v39 = vld [vmem:[%s482_s1 + $0xc0] sm:$0xff] }
   0xa   :  { %175 = vmatprep.subr.bf16.mxu0 %v174_v14  ;;  %v190_v38 = vpack.c.bf16 %v41_v36, %v39_v35  ;;  %v40_v40 = vld [vmem:[%s482_s1 + $0xd0] sm:$0xff]  ;;  %v13_v41 = vld [vmem:[%s481_s0 + $0x8] sm:$0xff]  ;;  %v45_v43 = vld [vmem:[%s482_s1 + $0xf8] sm:$0xff] }
   0xb   :  { %v43_v42 = vld [vmem:[%s482_s1 + $0xe8] sm:$0xff]  ;;  %142 = vmatprep.mubr.f32.mxu0 %v13_v41 }
   0xd   :  { %177 = vmatpush1.bf16.msra.mxu0 %v176_v19 }
   0xe   :  { %179 = vmatprep.subr.bf16.mxu0 %v178_v20 }
  0x11   :  { %181 = vmatpush1.bf16.msra.mxu0 %v180_v25 }
  0x12   :  { %183 = vmatprep.subr.bf16.mxu0 %v182_v26 }
  0x15   :  { %185 = vmatpush1.bf16.msra.mxu0 %v184_v31 }
  0x16   :  { %187 = vmatprep.subr.bf16.mxu0 %v186_v32 }
  0x17   :  { %7 = vsyncpa [#allocation3], 0  ;;  %v192_v44 = vpack.c.bf16 %v40_v40, %v38_v39  ;;  %v194_v45 = vpack.c.bf16 %v45_v43, %v43_v42  ;;  %v42_v46 = vld [vmem:[%s482_s1 + $0xe0] sm:$0xff]  ;;  %v44_v47 = vld [vmem:[%s482_s1 + $0xf0] sm:$0xff]  ;;  %s255_s29 = smov [#allocation2]   ;;  %vm150_vm0 = vcmask 64512  }
  0x18   :  { %v47_v48 = vld [vmem:[%s482_s1 + $0x108] sm:$0xff]  ;;  %v49_v49 = vld [vmem:[%s482_s1 + $0x118] sm:$0xff]  ;;  %v196_v50 = vpack.c.bf16 %v44_v47, %v42_v46  ;;  %v46_v52 = vld [vmem:[%s482_s1 + $0x100] sm:$0xff]  ;;  %s158_s30 = sshll.u32 %s255_s29, 4  ;;  %s159_s30 = int_to_ptr.vmem [resolvable:$true] %s158_s30 }
  0x19   :  { %189 = vmatpush1.bf16.msra.mxu0 %v188_v37  ;;  %v198_v51 = vpack.c.bf16 %v49_v49, %v47_v48  ;;  %v48_v53 = vld [vmem:[%s482_s1 + $0x110] sm:$0xff]  ;;  %v51_v54 = vld [vmem:[%s482_s1 + $0x128] sm:$0xff]  ;;  %v53_v55 = vld [vmem:[%s482_s1 + $0x138] sm:$0xff]  ;;  %s231_s3 = scalar_lea.vmem %s159_s30, 256  ;;  %p236_p1 = scmp.lt.s32.totalorder %s159_s30, %s159_s30 }
  0x1a   :  { %191 = vmatprep.subr.bf16.mxu0 %v190_v38  ;;  %v200_v56 = vpack.c.bf16 %v48_v53, %v46_v52  ;;  %v202_v57 = vpack.c.bf16 %v53_v55, %v51_v54  ;;  %v50_v58 = vld [vmem:[%s482_s1 + $0x120] sm:$0xff]  ;;  %v52_v59 = vld [vmem:[%s482_s1 + $0x130] sm:$0xff]  ;;  %v55_v60 = vld [vmem:[%s482_s1 + $0x148] sm:$0xff]  ;;  %p232_p0 = scmp.ne.s32.totalorder %s159_s30, %s231_s3  ;;  %p237_p2 = scmp.lt.s32.totalorder %s231_s3, %s231_s3 }
  0x1b   :  { %v57_v61 = vld [vmem:[%s482_s1 + $0x158] sm:$0xff]  ;;  %v204_v62 = vpack.c.bf16 %v52_v59, %v50_v58  ;;  %v54_v0 = vld [vmem:[%s482_s1 + $0x140] sm:$0xff]  ;;  %v56_v1 = vld [vmem:[%s482_s1 + $0x150] sm:$0xff] }
  0x1c   :  { %v206_v63 = vpack.c.bf16 %v57_v61, %v55_v60  ;;  %v59_v2 = vld [vmem:[%s482_s1 + $0x168] sm:$0xff]  ;;  %v61_v3 = vld [vmem:[%s482_s1 + $0x178] sm:$0xff]  ;;  %v208_v4 = vpack.c.bf16 %v56_v1, %v54_v0  ;;  %v58_v6 = vld [vmem:[%s482_s1 + $0x160] sm:$0xff]  ;;  %p238_p3 = por %p237_p2, %p236_p1 }
  0x1d   :  { %193 = vmatpush1.bf16.msra.mxu0 %v192_v44  ;;  %v210_v5 = vpack.c.bf16 %v61_v3, %v59_v2  ;;  %v60_v7 = vld [vmem:[%s482_s1 + $0x170] sm:$0xff]  ;;  %v63_v8 = vld [vmem:[%s482_s1 + $0x188] sm:$0xff]  ;;  %v65_v9 = vld [vmem:[%s482_s1 + $0x198] sm:$0xff] }
  0x1e   :  { %195 = vmatprep.subr.bf16.mxu0 %v194_v45  ;;  %v212_v10 = vpack.c.bf16 %v60_v7, %v58_v6  ;;  %v214_v11 = vpack.c.bf16 %v65_v9, %v63_v8  ;;  %v62_v12 = vld [vmem:[%s482_s1 + $0x180] sm:$0xff]  ;;  %v64_v13 = vld [vmem:[%s482_s1 + $0x190] sm:$0xff]  ;;  %v67_v14 = vld [vmem:[%s482_s1 + $0x1a8] sm:$0xff]  ;;  %p239_p4 = pnand %p238_p3, %p232_p0 }
  0x1f   :  { %v69_v15 = vld [vmem:[%s482_s1 + $0x1b8] sm:$0xff]  ;;  %v216_v16 = vpack.c.bf16 %v64_v13, %v62_v12  ;;  %v66_v18 = vld [vmem:[%s482_s1 + $0x1a0] sm:$0xff]  ;;  %v68_v19 = vld [vmem:[%s482_s1 + $0x1b0] sm:$0xff] }
  0x20   :  { %v218_v17 = vpack.c.bf16 %v69_v15, %v67_v14  ;;  %v71_v20 = vld [vmem:[%s482_s1 + $0x1c8] sm:$0xff]  ;;  %v73_v21 = vld [vmem:[%s482_s1 + $0x1d8] sm:$0xff]  ;;  %v220_v22 = vpack.c.bf16 %v68_v19, %v66_v18  ;;  %v70_v24 = vld [vmem:[%s482_s1 + $0x1c0] sm:$0xff] }
  0x21   :  { %197 = vmatpush1.bf16.msra.mxu0 %v196_v50  ;;  %v222_v23 = vpack.c.bf16 %v73_v21, %v71_v20  ;;  %v72_v25 = vld [vmem:[%s482_s1 + $0x1d0] sm:$0xff]  ;;  %v75_v26 = vld [vmem:[%s482_s1 + $0x1e8] sm:$0xff]  ;;  %v77_v27 = vld [vmem:[%s482_s1 + $0x1f8] sm:$0xff] }
  0x22   :  { %199 = vmatprep.subr.bf16.mxu0 %v198_v51  ;;  %v224_v28 = vpack.c.bf16 %v72_v25, %v70_v24  ;;  %v226_v29 = vpack.c.bf16 %v77_v27, %v75_v26  ;;  %v74_v30 = vld [vmem:[%s482_s1 + $0x1e0] sm:$0xff]  ;;  %v76_v31 = vld [vmem:[%s482_s1 + $0x1f0] sm:$0xff] }
  0x23   :  { %v228_v32 = vpack.c.bf16 %v76_v31, %v74_v30  ;;  %v12_v33 = vld [vmem:[%s481_s0] sm:$0xff] }
  0x25   :  { %201 = vmatpush1.bf16.msra.mxu0 %v200_v56 }
  0x26   :  { %203 = vmatprep.subr.bf16.mxu0 %v202_v57 }
  0x29   :  { %205 = vmatpush1.bf16.msra.mxu0 %v204_v62 }
  0x2a   :  { %207 = vmatprep.subr.bf16.mxu0 %v206_v63 }
  0x2d   :  { %209 = vmatpush1.bf16.msra.mxu0 %v208_v4 }
  0x2e   :  { %211 = vmatprep.subr.bf16.mxu0 %v210_v5 }
  0x31   :  { %213 = vmatpush1.bf16.msra.mxu0 %v212_v10 }
  0x32   :  { %215 = vmatprep.subr.bf16.mxu0 %v214_v11 }
  0x35   :  { %217 = vmatpush1.bf16.msra.mxu0 %v216_v16 }
  0x36   :  { %219 = vmatprep.subr.bf16.mxu0 %v218_v17 }
  0x39   :  { %221 = vmatpush1.bf16.msra.mxu0 %v220_v22 }
  0x3a   :  { %223 = vmatprep.subr.bf16.mxu0 %v222_v23 }
  0x3d   :  { %225 = vmatpush1.bf16.msra.mxu0 %v224_v28 }
  0x3e   :  { %227 = vmatprep.subr.bf16.mxu0 %v226_v29 }
  0x41   :  { %229 = vmatpush1.bf16.msra.mxu0 %v228_v32 }
  0x44   :  { %143 = vmatmul.mubr.f32.vlgmr.msra.gmra.mrb[0].mxu0 %v12_v33 }
 0x117   :  { %v144_v34 = vpop.f32.mrb[0].mxu0 }
 0x118   :  { %149 = vst [vmem:[#allocation2] sm:$0xff] %v144_v34  ;;  %v146_v35 = vpop.f32.mrb[1].mxu0 }
 0x119   :  { %151 = vst.msk [vmem:[#allocation2 + $0x8] sm:$0xff] %vm150_vm0, %v146_v35 }
 0x11a   :  { %242 = shalt.err (!%p239_p4)
}
 0x11b   :  { %s243_s0 = scalar_lea.hbm %s483_s2, 256 }
 0x11c   :  { %p244_p5 = scmp.ne.s32.totalorder %s483_s2, %s243_s0  ;;  %p247_p6 = scmp.lt.u32.totalorder %s243_s0, %s483_s2 }
 0x11e   :  { %p249_p7 = pnand %p247_p6, %p244_p5 }
 0x120   :  { %252 = shalt.err (!%p249_p7)
}
 0x121   :  { %161 = dma.vmem_to_hbm [thread:$0]  %s159_s30, 256, %s483_s2, [#allocation3]  }
 0x122   :  { %253 = dma.done.wait [#allocation3], 256  }
 0x123   :  { %254 = vsyncadd [#allocation3], 4294967040 }
 0x124   :  { %165 = vsyncpa [#allocation3], 1 }

</bundles_post_ra>
